<compile_context>
chip_gen: v5e
topology: v5e:2x2
jax: 0.10.0
libtpu: 0.0.40
codegen_flags: <defaults>
</compile_context>

<pallas_src>
import functools

import jax
import jax.numpy as jnp
from jax.experimental import pallas as pl
from jax.experimental.pallas import tpu as pltpu


# ----------------------------- configuration --------------------------------
TYPES = ["person", "name", "age"]          # order matters (maps to type ids)
BLANK_TYPE_IDX = 0                         # "person"  -> BlankAttribute
CAT_TYPE_IDX = 1                           # "name"    -> CategoricalAttribute
CONT_TYPE_IDX = 2                          # "age"     -> ContinuousAttribute
NUM_CATEGORIES = 5                         # categories for "name"
TYPE_EMBEDDING_DIM = 8
ATTR_EMBEDDING_DIM = 16
ENCODE_PREEXISTENCE = True
OUT_DIM = int(ENCODE_PREEXISTENCE) + TYPE_EMBEDDING_DIM + ATTR_EMBEDDING_DIM


def _round_up(x, m):
    return (x + m - 1) // m * m


# ------------------------------- Pallas kernel ------------------------------
def embedder_kernel(x_ref, prm_ref, out_ref, *, T, C, Dt, Da,
                    cat_idx, cont_idx, o_type, o_cat, o_w2, o_w3, o_vec):
    # x_ref  : (3, tn)   rows on lanes
    # prm_ref: (R, L)    packed constants (sublane-segmented)
    # out_ref: (1+Dt+Da, tn)
    pre = x_ref[0:1, :]                               # (1, tn)
    typ = x_ref[1:2, :].astype(jnp.int32)             # (1, tn)
    val = x_ref[2:3, :]                               # (1, tn)
    vali = val.astype(jnp.int32)                      # (1, tn)

    prm = prm_ref[...]                                # small constant block
    type_tab = prm[o_type:o_type + Dt, :]             # (Dt, L), cols 0:T valid
    cat_tab = prm[o_cat:o_cat + Da, :]                # (Da, L), cols 0:C valid
    w2t = prm[o_w2:o_w2 + Da, 0:Da]                   # (Da, Da) = W2^T
    w3t = prm[o_w3:o_w3 + Da, 0:Da]                   # (Da, Da) = W3^T
    vecs = prm[o_vec:o_vec + Da, :]                   # (Da, L): w1|b1|b2|b3 cols
    w1 = vecs[:, 0:1]
    b1 = vecs[:, 1:2]
    b2 = vecs[:, 2:3]
    b3 = vecs[:, 3:4]

    # ---- type embedding: sum of VPU selects (replaces one-hot @ table) ------
    type_emb = jnp.where(typ == 0, type_tab[:, 0:1], 0.0)         # (Dt, tn)
    for t in range(1, T):
        type_emb = type_emb + jnp.where(typ == t, type_tab[:, t:t + 1], 0.0)

    # ---- categorical attribute: sum of VPU selects --------------------------
    cat_emb = jnp.where(vali == 0, cat_tab[:, 0:1], 0.0)          # (Da, tn)
    for c in range(1, C):
        cat_emb = cat_emb + jnp.where(vali == c, cat_tab[:, c:c + 1], 0.0)

    # ---- continuous attribute: 3-layer ReLU MLP on the scalar value ---------
    # layer 1 (K=1 outer product) on the VPU; layers 2/3 on the idle MXU.
    h = jnp.maximum(w1 * val + b1, 0.0)                           # (Da, tn)
    h = jnp.maximum(jnp.dot(w2t, h, preferred_element_type=jnp.float32) + b2, 0.0)
    cont_emb = jnp.maximum(
        jnp.dot(w3t, h, preferred_element_type=jnp.float32) + b3, 0.0)

    # ---- typewise select (disjoint masks; blank type contributes zeros) -----
    attr_emb = (jnp.where(typ == cat_idx, cat_emb, 0.0)
                + jnp.where(typ == cont_idx, cont_emb, 0.0))      # (Da, tn)

    # ---- direct sliced, lane-dense stores (no concatenate) ------------------
    out_ref[0:1, :] = pre
    out_ref[1:1 + Dt, :] = type_emb
    out_ref[1 + Dt:1 + Dt + Da, :] = attr_emb


# ---------------------------- parameter packing ------------------------------
def pack_params(params, *, T, C, Dt, Da):
    """Pack all constant parameters (pre-transposed) into one small 2-D array."""
    L = max(Da, T, C, 4)
    rDt = _round_up(Dt, 8)
    rDa = _round_up(Da, 8)

    def pad_to(a, rows):
        r, c = a.shape
        return jnp.pad(a.astype(jnp.float32), ((0, rows - r), (0, L - c)))

    seg_type = pad_to(params["type_tab"].T, rDt)                  # (rDt, L)
    seg_cat = pad_to(params["cat_tab"].T, rDa)                    # (rDa, L)
    seg_w2 = pad_to(params["w2"].T, rDa)                          # (rDa, L)
    seg_w3 = pad_to(params["w3"].T, rDa)                          # (rDa, L)
    vecs = jnp.concatenate([params["w1"].T, params["b1"].T,
                            params["b2"].T, params["b3"].T], axis=1)  # (Da, 4)
    seg_vec = pad_to(vecs, rDa)                                   # (rDa, L)

    prm = jnp.concatenate([seg_type, seg_cat, seg_w2, seg_w3, seg_vec], axis=0)
    offs = dict(o_type=0, o_cat=rDt, o_w2=rDt + rDa,
                o_w3=rDt + 2 * rDa, o_vec=rDt + 3 * rDa)
    return prm, offs


# -------------------------------- wrapper ------------------------------------
def embedder_forward(X, params, *, row_tile=8192):
    """Fused Embedder forward (transposed, lane-dense layout).

    row_tile = rows per grid step (rounded up to a multiple of 128).
    VMEM/step ~= 320 B * row_tile (double-buffered (8,tn)+(32,tn) f32 tiles):
      v5e ~4K-8K rows, v6e ~16K-32K, v7x ~8K-16K all fit the default scoped
      VMEM limit; keep the grid >= a few steps for DMA overlap / megacore.
    Arbitrary N is handled by lane-axis zero padding (sliced away afterwards).
    """
    N = X.shape[0]
    T, Dt = params["type_tab"].shape
    C, Da = params["cat_tab"].shape
    out_dim = 1 + Dt + Da

    tn = _round_up(min(row_tile, _round_up(N, 128)), 128)
    Np = _round_up(N, tn)

    x_t = jnp.transpose(X.astype(jnp.float32))        # (3, N): rows -> lanes
    if Np != N:
        x_t = jnp.pad(x_t, ((0, 0), (0, Np - N)))     # remainder handling

    prm, offs = pack_params(params, T=T, C=C, Dt=Dt, Da=Da)

    kernel = functools.partial(
        embedder_kernel, T=T, C=C, Dt=Dt, Da=Da,
        cat_idx=CAT_TYPE_IDX, cont_idx=CONT_TYPE_IDX, **offs)

    out_t = pl.pallas_call(
        kernel,
        out_shape=jax.ShapeDtypeStruct((out_dim, Np), jnp.float32),
        grid_spec=pl.GridSpec(
            grid=(Np // tn,),
            in_specs=[
                pl.BlockSpec((3, tn), lambda i: (0, i)),      # X^T, row-tiled
                pl.BlockSpec(prm.shape, lambda i: (0, 0)),    # packed constants
            ],
            out_specs=pl.BlockSpec((out_dim, tn), lambda i: (0, i)),
        ),
        compiler_params=pltpu.CompilerParams(
            dimension_semantics=("parallel",)),
    )(x_t, prm)

    return jnp.transpose(out_t[:, :N])                # (N, out_dim)


# ---------------------------- pure-JAX reference -----------------------------
def embedder_reference(X, params):
    pre = X[:, 0:1]
    typ = X[:, 1].astype(jnp.int32)
    val = X[:, 2:3]
    type_emb = params["type_tab"][typ]
    cat_emb = params["cat_tab"][val[:, 0].astype(jnp.int32)]
    h = jnp.maximum(val @ params["w1"] + params["b1"], 0.0)
    h = jnp.maximum(h @ params["w2"] + params["b2"], 0.0)
    cont_emb = jnp.maximum(h @ params["w3"] + params["b3"], 0.0)
    attr = (jnp.where((typ == CAT_TYPE_IDX)[:, None], cat_emb, 0.0)
            + jnp.where((typ == CONT_TYPE_IDX)[:, None], cont_emb, 0.0))
    return jnp.concatenate([pre, type_emb, attr], axis=-1)


# ---------------------------------- main --------------------------------------
if __name__ == "__main__":
    key = jax.random.PRNGKey(0)
    k_tt, k_ct, k_w1, k_w2, k_w3, k_pre, k_typ, k_val = jax.random.split(key, 8)

    # N deliberately NOT a multiple of the row tile -> exercises padding + a
    # multi-step grid (row_tile=128 below -> 3 grid steps).
    N = 300
    Dt, Da, T, C = TYPE_EMBEDDING_DIM, ATTR_EMBEDDING_DIM, len(TYPES), NUM_CATEGORIES

    params = {
        "type_tab": jax.random.normal(k_tt, (T, Dt), jnp.float32),
        "cat_tab": jax.random.normal(k_ct, (C, Da), jnp.float32),
        "w1": jax.random.normal(k_w1, (1, Da), jnp.float32) * 0.5,
        "b1": jnp.zeros((1, Da), jnp.float32),
        "w2": jax.random.normal(k_w2, (Da, Da), jnp.float32) * (1.0 / Da ** 0.5),
        "b2": jnp.zeros((1, Da), jnp.float32),
        "w3": jax.random.normal(k_w3, (Da, Da), jnp.float32) * (1.0 / Da ** 0.5),
        "b3": jnp.zeros((1, Da), jnp.float32),
    }

    # X: (N, 3) = (preexistence bit, type id, attribute value)
    pre = jax.random.bernoulli(k_pre, 0.5, (N, 1)).astype(jnp.float32)
    typ = jax.random.randint(k_typ, (N, 1), 0, T).astype(jnp.float32)
    raw_val = jax.random.uniform(k_val, (N, 1), jnp.float32, 0.0, 1.0)
    # categorical rows carry an integer category id; continuous rows a float in [0,1)
    val = jnp.where(typ == CAT_TYPE_IDX,
                    jnp.floor(raw_val * C), raw_val).astype(jnp.float32)
    X = jnp.concatenate([pre, typ, val], axis=-1)

    out = embedder_forward(X, params, row_tile=128)
    out = jax.block_until_ready(out)

    ref = embedder_reference(X, params)
    assert out.shape == (N, OUT_DIM)
    assert jnp.allclose(out, ref, atol=1e-4, rtol=1e-4), \
        float(jnp.max(jnp.abs(out - ref)))
    print("KERNEL_OK")
</pallas_src>

<mosaic_0001>
module attributes {stable_mosaic.version = 11 : i64} {
  func.func @embedder_kernel(%arg0: i32, %arg1: memref<3x128xf32, #tpu.memory_space<vmem>>, %arg2: memref<72x16xf32, #tpu.memory_space<vmem>>, %arg3: memref<25x128xf32, #tpu.memory_space<vmem>>) attributes {dimension_semantics = [#tpu.dimension_semantics<parallel>], iteration_bounds = array<i64: 3>, scalar_prefetch = 0 : i64, scratch_operands = 0 : i64, tpu.core_type = #tpu.core_type<tc>, window_params = [{transform_indices = @transform_0, window_bounds = array<i64: 3, 128>}, {pipeline_mode = #tpu.pipeline_mode<synchronous>, transform_indices = @transform_1, window_bounds = array<i64: 72, 16>}, {transform_indices = @transform_2, window_bounds = array<i64: 25, 128>}]} {
    %c0 = arith.constant 0 : index
    %c0_0 = arith.constant 0 : index
    %0 = vector.load %arg1[%c0, %c0_0] : memref<3x128xf32, #tpu.memory_space<vmem>>, vector<1x128xf32>
    %c1 = arith.constant 1 : index
    %c0_1 = arith.constant 0 : index
    %1 = vector.load %arg1[%c1, %c0_1] : memref<3x128xf32, #tpu.memory_space<vmem>>, vector<1x128xf32>
    %2 = arith.fptosi %1 : vector<1x128xf32> to vector<1x128xi32>
    %c2 = arith.constant 2 : index
    %c0_2 = arith.constant 0 : index
    %3 = vector.load %arg1[%c2, %c0_2] : memref<3x128xf32, #tpu.memory_space<vmem>>, vector<1x128xf32>
    %4 = arith.fptosi %3 : vector<1x128xf32> to vector<1x128xi32>
    %c0_3 = arith.constant 0 : index
    %c0_4 = arith.constant 0 : index
    %5 = vector.load %arg2[%c0_3, %c0_4] : memref<72x16xf32, #tpu.memory_space<vmem>>, vector<72x16xf32>
    %6 = vector.extract_strided_slice %5 {offsets = [0, 0], sizes = [8, 16], strides = [1, 1]} : vector<72x16xf32> to vector<8x16xf32>
    %7 = vector.extract_strided_slice %5 {offsets = [8, 0], sizes = [16, 16], strides = [1, 1]} : vector<72x16xf32> to vector<16x16xf32>
    %8 = vector.extract_strided_slice %5 {offsets = [24, 0], sizes = [16, 16], strides = [1, 1]} : vector<72x16xf32> to vector<16x16xf32>
    %9 = vector.extract_strided_slice %5 {offsets = [40, 0], sizes = [16, 16], strides = [1, 1]} : vector<72x16xf32> to vector<16x16xf32>
    %10 = vector.extract_strided_slice %5 {offsets = [56, 0], sizes = [16, 16], strides = [1, 1]} : vector<72x16xf32> to vector<16x16xf32>
    %11 = vector.extract_strided_slice %10 {offsets = [0, 0], sizes = [16, 1], strides = [1, 1]} : vector<16x16xf32> to vector<16x1xf32>
    %12 = vector.extract_strided_slice %10 {offsets = [0, 1], sizes = [16, 1], strides = [1, 1]} : vector<16x16xf32> to vector<16x1xf32>
    %13 = vector.extract_strided_slice %10 {offsets = [0, 2], sizes = [16, 1], strides = [1, 1]} : vector<16x16xf32> to vector<16x1xf32>
    %14 = vector.extract_strided_slice %10 {offsets = [0, 3], sizes = [16, 1], strides = [1, 1]} : vector<16x16xf32> to vector<16x1xf32>
    %c0_i32 = arith.constant 0 : i32
    %15 = vector.broadcast %c0_i32 : i32 to vector<1x128xi32>
    %16 = arith.cmpi eq, %2, %15 : vector<1x128xi32>
    %17 = vector.extract_strided_slice %6 {offsets = [0, 0], sizes = [8, 1], strides = [1, 1]} : vector<8x16xf32> to vector<8x1xf32>
    %cst = arith.constant 0.000000e+00 : f32
    %18 = vector.shape_cast %16 : vector<1x128xi1> to vector<1x128xi1>
    %19 = vector.broadcast %18 : vector<1x128xi1> to vector<8x128xi1>
    %20 = vector.shape_cast %17 : vector<8x1xf32> to vector<8x1xf32>
    %21 = vector.broadcast %20 : vector<8x1xf32> to vector<8x128xf32>
    %22 = vector.broadcast %cst : f32 to vector<8x128xf32>
    %23 = arith.select %19, %21, %22 : vector<8x128xi1>, vector<8x128xf32>
    %c1_i32 = arith.constant 1 : i32
    %24 = vector.broadcast %c1_i32 : i32 to vector<1x128xi32>
    %25 = arith.cmpi eq, %2, %24 : vector<1x128xi32>
    %26 = vector.extract_strided_slice %6 {offsets = [0, 1], sizes = [8, 1], strides = [1, 1]} : vector<8x16xf32> to vector<8x1xf32>
    %cst_5 = arith.constant 0.000000e+00 : f32
    %27 = vector.shape_cast %25 : vector<1x128xi1> to vector<1x128xi1>
    %28 = vector.broadcast %27 : vector<1x128xi1> to vector<8x128xi1>
    %29 = vector.shape_cast %26 : vector<8x1xf32> to vector<8x1xf32>
    %30 = vector.broadcast %29 : vector<8x1xf32> to vector<8x128xf32>
    %31 = vector.broadcast %cst_5 : f32 to vector<8x128xf32>
    %32 = arith.select %28, %30, %31 : vector<8x128xi1>, vector<8x128xf32>
    %33 = arith.addf %23, %32 : vector<8x128xf32>
    %c2_i32 = arith.constant 2 : i32
    %34 = vector.broadcast %c2_i32 : i32 to vector<1x128xi32>
    %35 = arith.cmpi eq, %2, %34 : vector<1x128xi32>
    %36 = vector.extract_strided_slice %6 {offsets = [0, 2], sizes = [8, 1], strides = [1, 1]} : vector<8x16xf32> to vector<8x1xf32>
    %cst_6 = arith.constant 0.000000e+00 : f32
    %37 = vector.shape_cast %35 : vector<1x128xi1> to vector<1x128xi1>
    %38 = vector.broadcast %37 : vector<1x128xi1> to vector<8x128xi1>
    %39 = vector.shape_cast %36 : vector<8x1xf32> to vector<8x1xf32>
    %40 = vector.broadcast %39 : vector<8x1xf32> to vector<8x128xf32>
    %41 = vector.broadcast %cst_6 : f32 to vector<8x128xf32>
    %42 = arith.select %38, %40, %41 : vector<8x128xi1>, vector<8x128xf32>
    %43 = arith.addf %33, %42 : vector<8x128xf32>
    %c0_i32_7 = arith.constant 0 : i32
    %44 = vector.broadcast %c0_i32_7 : i32 to vector<1x128xi32>
    %45 = arith.cmpi eq, %4, %44 : vector<1x128xi32>
    %46 = vector.extract_strided_slice %7 {offsets = [0, 0], sizes = [16, 1], strides = [1, 1]} : vector<16x16xf32> to vector<16x1xf32>
    %cst_8 = arith.constant 0.000000e+00 : f32
    %47 = vector.shape_cast %45 : vector<1x128xi1> to vector<1x128xi1>
    %48 = vector.broadcast %47 : vector<1x128xi1> to vector<16x128xi1>
    %49 = vector.shape_cast %46 : vector<16x1xf32> to vector<16x1xf32>
    %50 = vector.broadcast %49 : vector<16x1xf32> to vector<16x128xf32>
    %51 = vector.broadcast %cst_8 : f32 to vector<16x128xf32>
    %52 = arith.select %48, %50, %51 : vector<16x128xi1>, vector<16x128xf32>
    %c1_i32_9 = arith.constant 1 : i32
    %53 = vector.broadcast %c1_i32_9 : i32 to vector<1x128xi32>
    %54 = arith.cmpi eq, %4, %53 : vector<1x128xi32>
    %55 = vector.extract_strided_slice %7 {offsets = [0, 1], sizes = [16, 1], strides = [1, 1]} : vector<16x16xf32> to vector<16x1xf32>
    %cst_10 = arith.constant 0.000000e+00 : f32
    %56 = vector.shape_cast %54 : vector<1x128xi1> to vector<1x128xi1>
    %57 = vector.broadcast %56 : vector<1x128xi1> to vector<16x128xi1>
    %58 = vector.shape_cast %55 : vector<16x1xf32> to vector<16x1xf32>
    %59 = vector.broadcast %58 : vector<16x1xf32> to vector<16x128xf32>
    %60 = vector.broadcast %cst_10 : f32 to vector<16x128xf32>
    %61 = arith.select %57, %59, %60 : vector<16x128xi1>, vector<16x128xf32>
    %62 = arith.addf %52, %61 : vector<16x128xf32>
    %c2_i32_11 = arith.constant 2 : i32
    %63 = vector.broadcast %c2_i32_11 : i32 to vector<1x128xi32>
    %64 = arith.cmpi eq, %4, %63 : vector<1x128xi32>
    %65 = vector.extract_strided_slice %7 {offsets = [0, 2], sizes = [16, 1], strides = [1, 1]} : vector<16x16xf32> to vector<16x1xf32>
    %cst_12 = arith.constant 0.000000e+00 : f32
    %66 = vector.shape_cast %64 : vector<1x128xi1> to vector<1x128xi1>
    %67 = vector.broadcast %66 : vector<1x128xi1> to vector<16x128xi1>
    %68 = vector.shape_cast %65 : vector<16x1xf32> to vector<16x1xf32>
    %69 = vector.broadcast %68 : vector<16x1xf32> to vector<16x128xf32>
    %70 = vector.broadcast %cst_12 : f32 to vector<16x128xf32>
    %71 = arith.select %67, %69, %70 : vector<16x128xi1>, vector<16x128xf32>
    %72 = arith.addf %62, %71 : vector<16x128xf32>
    %c3_i32 = arith.constant 3 : i32
    %73 = vector.broadcast %c3_i32 : i32 to vector<1x128xi32>
    %74 = arith.cmpi eq, %4, %73 : vector<1x128xi32>
    %75 = vector.extract_strided_slice %7 {offsets = [0, 3], sizes = [16, 1], strides = [1, 1]} : vector<16x16xf32> to vector<16x1xf32>
    %cst_13 = arith.constant 0.000000e+00 : f32
    %76 = vector.shape_cast %74 : vector<1x128xi1> to vector<1x128xi1>
    %77 = vector.broadcast %76 : vector<1x128xi1> to vector<16x128xi1>
    %78 = vector.shape_cast %75 : vector<16x1xf32> to vector<16x1xf32>
    %79 = vector.broadcast %78 : vector<16x1xf32> to vector<16x128xf32>
    %80 = vector.broadcast %cst_13 : f32 to vector<16x128xf32>
    %81 = arith.select %77, %79, %80 : vector<16x128xi1>, vector<16x128xf32>
    %82 = arith.addf %72, %81 : vector<16x128xf32>
    %c4_i32 = arith.constant 4 : i32
    %83 = vector.broadcast %c4_i32 : i32 to vector<1x128xi32>
    %84 = arith.cmpi eq, %4, %83 : vector<1x128xi32>
    %85 = vector.extract_strided_slice %7 {offsets = [0, 4], sizes = [16, 1], strides = [1, 1]} : vector<16x16xf32> to vector<16x1xf32>
    %cst_14 = arith.constant 0.000000e+00 : f32
    %86 = vector.shape_cast %84 : vector<1x128xi1> to vector<1x128xi1>
    %87 = vector.broadcast %86 : vector<1x128xi1> to vector<16x128xi1>
    %88 = vector.shape_cast %85 : vector<16x1xf32> to vector<16x1xf32>
    %89 = vector.broadcast %88 : vector<16x1xf32> to vector<16x128xf32>
    %90 = vector.broadcast %cst_14 : f32 to vector<16x128xf32>
    %91 = arith.select %87, %89, %90 : vector<16x128xi1>, vector<16x128xf32>
    %92 = arith.addf %82, %91 : vector<16x128xf32>
    %93 = vector.broadcast %11 : vector<16x1xf32> to vector<16x128xf32>
    %94 = vector.broadcast %3 : vector<1x128xf32> to vector<16x128xf32>
    %95 = arith.mulf %93, %94 : vector<16x128xf32>
    %96 = vector.broadcast %12 : vector<16x1xf32> to vector<16x128xf32>
    %97 = arith.addf %95, %96 : vector<16x128xf32>
    %cst_15 = arith.constant 0.000000e+00 : f32
    %98 = vector.broadcast %cst_15 : f32 to vector<16x128xf32>
    %99 = arith.maximumf %97, %98 : vector<16x128xf32>
    %cst_16 = arith.constant dense<0.000000e+00> : vector<16x128xf32>
    %100 = tpu.matmul %8, %99, %cst_16 {dimension_numbers = #tpu.dot_dimension_numbers<[1], [0], [0], [1], [0, 0, 1, 1], [], []>} : vector<16x16xf32>, vector<16x128xf32>, vector<16x128xf32> -> vector<16x128xf32>
    %101 = vector.broadcast %13 : vector<16x1xf32> to vector<16x128xf32>
    %102 = arith.addf %100, %101 : vector<16x128xf32>
    %cst_17 = arith.constant 0.000000e+00 : f32
    %103 = vector.broadcast %cst_17 : f32 to vector<16x128xf32>
    %104 = arith.maximumf %102, %103 : vector<16x128xf32>
    %cst_18 = arith.constant dense<0.000000e+00> : vector<16x128xf32>
    %105 = tpu.matmul %9, %104, %cst_18 {dimension_numbers = #tpu.dot_dimension_numbers<[1], [0], [0], [1], [0, 0, 1, 1], [], []>} : vector<16x16xf32>, vector<16x128xf32>, vector<16x128xf32> -> vector<16x128xf32>
    %106 = vector.broadcast %14 : vector<16x1xf32> to vector<16x128xf32>
    %107 = arith.addf %105, %106 : vector<16x128xf32>
    %cst_19 = arith.constant 0.000000e+00 : f32
    %108 = vector.broadcast %cst_19 : f32 to vector<16x128xf32>
    %109 = arith.maximumf %107, %108 : vector<16x128xf32>
    %c1_i32_20 = arith.constant 1 : i32
    %110 = vector.broadcast %c1_i32_20 : i32 to vector<1x128xi32>
    %111 = arith.cmpi eq, %2, %110 : vector<1x128xi32>
    %cst_21 = arith.constant 0.000000e+00 : f32
    %112 = vector.shape_cast %111 : vector<1x128xi1> to vector<1x128xi1>
    %113 = vector.broadcast %112 : vector<1x128xi1> to vector<16x128xi1>
    %114 = vector.broadcast %cst_21 : f32 to vector<16x128xf32>
    %115 = arith.select %113, %92, %114 : vector<16x128xi1>, vector<16x128xf32>
    %c2_i32_22 = arith.constant 2 : i32
    %116 = vector.broadcast %c2_i32_22 : i32 to vector<1x128xi32>
    %117 = arith.cmpi eq, %2, %116 : vector<1x128xi32>
    %cst_23 = arith.constant 0.000000e+00 : f32
    %118 = vector.shape_cast %117 : vector<1x128xi1> to vector<1x128xi1>
    %119 = vector.broadcast %118 : vector<1x128xi1> to vector<16x128xi1>
    %120 = vector.broadcast %cst_23 : f32 to vector<16x128xf32>
    %121 = arith.select %119, %109, %120 : vector<16x128xi1>, vector<16x128xf32>
    %122 = arith.addf %115, %121 : vector<16x128xf32>
    %c0_24 = arith.constant 0 : index
    %c0_25 = arith.constant 0 : index
    %123 = vector.load %arg3[%c0_24, %c0_25] : memref<25x128xf32, #tpu.memory_space<vmem>>, vector<1x128xf32>
    tpu.vector_store %arg3[%c0_24, %c0_25], %0 {strides = array<i32>} : memref<25x128xf32, #tpu.memory_space<vmem>>, vector<1x128xf32>,
    %c1_26 = arith.constant 1 : index
    %c0_27 = arith.constant 0 : index
    %124 = vector.load %arg3[%c1_26, %c0_27] : memref<25x128xf32, #tpu.memory_space<vmem>>, vector<8x128xf32>
    tpu.vector_store %arg3[%c1_26, %c0_27], %43 {strides = array<i32>} : memref<25x128xf32, #tpu.memory_space<vmem>>, vector<8x128xf32>,
    %c9 = arith.constant 9 : index
    %c0_28 = arith.constant 0 : index
    %125 = vector.load %arg3[%c9, %c0_28] : memref<25x128xf32, #tpu.memory_space<vmem>>, vector<16x128xf32>
    tpu.vector_store %arg3[%c9, %c0_28], %122 {strides = array<i32>} : memref<25x128xf32, #tpu.memory_space<vmem>>, vector<16x128xf32>,
    return
  }
  func.func @transform_0(%arg0: i32) -> (i32, i32) {
    %c0_i32 = arith.constant 0 : i32
    %c0_i32_0 = arith.constant 0 : i32
    return %c0_i32, %arg0 : i32, i32
  }
  func.func @transform_1(%arg0: i32) -> (i32, i32) {
    %c0_i32 = arith.constant 0 : i32
    %c0_i32_0 = arith.constant 0 : i32
    %c0_i32_1 = arith.constant 0 : i32
    return %c0_i32, %c0_i32_0 : i32, i32
  }
  func.func @transform_2(%arg0: i32) -> (i32, i32) {
    %c0_i32 = arith.constant 0 : i32
    %c0_i32_0 = arith.constant 0 : i32
    return %c0_i32, %arg0 : i32, i32
  }
}

</mosaic_0001>

<bundles_post_ra>
// kernel: tpu_custom_call.1
= control target key start
LH: loop header
LB: loop body
LE: loop exit
PB: predicated region body
PF: predicated region fallthrough
CT: control target
= control target key end

     0   :  { %7 = vsyncpa [#allocation3], 0  ;;  %s833_s0 = inlined_call_operand.vmem [shape: f32[3,384], index: 0, kind: input, shape index: {}]   ;;  %s834_s1 = inlined_call_operand.vmem [shape: f32[72,16], index: 1, kind: input, shape index: {}]   ;;  %s835_s2 = inlined_call_operand.hbm [shape: f32[25,384], index: 2, kind: output, shape index: {}]  }
   0x1   :  { %9 = vsyncpa [#allocation3 + $0x1], 0  ;;  %s630_s9 = smov 0   ;;  %s632_s10 = smov 0  }
   0x2   :  { %s634_s11 = smov 0   ;;  %s636_s12 = smov 0  }
   0x3 LB: > { %s651_s13 = sadd.s32 4294967295, %s605_s12   ;;  %s454_s14 = sadd.s32 4294967294, %s605_s12   ;;  %s605_s12 = sphi %s636_s12, %s855_s12   ;;  %s601_s11 = sphi %s634_s11, %s854_s11   ;;  %s597_s10 = sphi %s632_s10, %s853_s10   ;;  %s593_s9 = sphi %s630_s9, %s852_s9  }
   0x4   : > { %s655_s15 = sadd.s32 1, %s605_s12   ;;  %s69_s16 = sadd.s32 1, %s601_s11 }
   0x5   : > { %s66_s17 = ssub.s32 %s605_s12, %s655_s15  ;;  %p79_p0 = scmp.ne.s32.totalorder %s601_s11, %s597_s10 }
   0x6   : > { %p67_p1 = scmp.eq.s32.totalorder %s66_s17, 0  ;;  %p80_p2 = scmp.eq.s32.totalorder %s651_s13, 2 }
   0x7   : > { %p85_p3 = scmp.ne.s32.totalorder %s597_s10, %s593_s9  ;;  %p86_p4 = scmp.eq.s32.totalorder %s454_s14, 2 }
   0x8   : > { %s666_s18 = scalar_select %p67_p1, %s601_s11, %s69_s16  }
   0x9   : > { %p668_p5 = por %p80_p2, %p79_p0  ;;  %p672_p6 = por %p86_p4, %p85_p3 }
   0xa   : > { %p457_p7 = scmp.ge.s32.totalorder %s605_s12, 1  ;;  %p114_p8 = scmp.lt.s32.totalorder %s605_s12, 4 }
   0xc   : > { %p115_p9 = pnand %p457_p7, %p114_p8 }
   0xd   : > { %p135_p10 = scmp.lt.s32.totalorder (!%p115_p9), %s651_s13, 2  ;;  %s132_s4 = sand.u32 (!%p115_p9), 1, %s597_s10  }
   0xe   : > { %118 = sbr.rel (%p115_p9) target bundleno = 434 (0x1b2), region = 28  ;;  %s458_s6 = sshll.u32 (!%p115_p9), %s132_s4, 5 }
   0xf   : > { %s706_s16 = scalar_lea.vmem (!%p115_p9), [#allocation2], %s458_s6  ;;  %s465_s28 = sshll.u32 (!%p115_p9), %s651_s13, 3 }
  0x10   : > { %s378_s6 = scalar_lea.sflag (!%p115_p9), [#allocation3], %s132_s4  ;;  %s563_s21 = scalar_lea.hbm (!%p115_p9), %s835_s2, 96 }
  0x13   : > { %v152_v0 = vld [vmem:[%s834_s1 + $0x40] sm:$0xff]  ;;  %v607_v1 = vmov 1   ;;  %v608_v2 = vmov 0   ;;  %v609_v3 = vmov 2   ;;  %v151_v4 = vld [vmem:[%s834_s1 + $0x38] sm:$0xff]  ;;  %v145_v6 = vld [vmem:[%s834_s1 + $0x8] sm:$0xff] }
  0x14   : > { %530 = vset.pattern.permute.xlu1 %v607_v1  ;;  %529 = vset.pattern.permute.xlu0 %v608_v2  ;;  %v144_v5 = vld [vmem:[%s834_s1] sm:$0xff]  ;;  %v146_v7 = vld [vmem:[%s834_s1 + $0x10] sm:$0xff]  ;;  %v610_v8 = vmov 3   ;;  %v611_v9 = vmov 4   ;;  %s136_s3 = scalar_select %p135_p10, %s651_s13, 2  ;;  %v147_v35 = vld [vmem:[%s834_s1 + $0x18] sm:$0xff] }
  0x15   : > { %281 = vperm.xlu1 %530, %v152_v0   ;;  %270 = vperm.xlu0 %529, %v152_v0   ;;  %vm296_vm4 = vcmask 130048   ;;  %v148_v36 = vld [vmem:[%s834_s1 + $0x20] sm:$0xff]  ;;  %v149_v53 = vld [vmem:[%s834_s1 + $0x28] sm:$0xff]  ;;  %v150_v54 = vld [vmem:[%s834_s1 + $0x30] sm:$0xff]  ;;  %s389_s13 = sshll.u32 %s706_s16, 4  ;;  %s390_s13 = int_to_ptr.vmem [resolvable:$true] %s389_s13 }
  0x16   : > { %531 = vset.pattern.permute.xlu2 %v609_v3  ;;  %s459_s5 = sshll.u32 %s136_s3, 2  ;;  %s388_s3 = scalar_lea.hbm %s835_s2, %s465_s28 }
  0x17   : > { %293 = vperm.xlu2 %531, %v152_v0   ;;  %s703_s14 = scalar_lea.vmem %s833_s0, %s459_s5  ;;  %s391_s5 = sshll.u32 %s388_s3, 4  ;;  %s392_s5 = int_to_ptr.hbm [resolvable:$true] %s391_s5 }
  0x18   : > { %v139_v10 = vld [vmem:[%s703_s14] sm:$0x1]  ;;  %v140_v11 = vld [vmem:[%s703_s14 + $0x1] sm:$0x1]  ;;  %v542_v15 = vld [vmem:[%s703_s14 + $0x2] ss:$0 sm:$0xff] }
  0x19   : > { %373 = vst [vmem:[%s706_s16] sm:$0x1] %v139_v10  ;;  %v473_v12 = vceil.f32 %v140_v11  ;;  %v474_v13 = vfloor.f32 %v140_v11  ;;  %vm472_vm0 = vcmp.lt.s32.totalorder %v140_v11, 0  ;;  %v142_v55 = vld [vmem:[%s703_s14 + $0x2] sm:$0x1]  ;;  %s557_s7 = sshra.s32 %s392_s5, 4  ;;  %s558_s7 = int_to_ptr.hbm [resolvable:$true] %s557_s7 }
  0x1a   : > { %v478_v58 = vceil.f32 %v142_v55  ;;  %v479_v59 = vfloor.f32 %v142_v55  ;;  %vm477_vm8 = vcmp.lt.s32.totalorder %v142_v55, 0  ;;  %s559_s8 = scalar_lea.hbm %s558_s7, 32  ;;  %p564_p0 = scmp.lt.s32.totalorder %s558_s7, %s835_s2 }
  0x1b   : > { %v475_v16 = vsel %vm472_vm0, %v473_v12, %v474_v13  ;;  %p560_p11 = scmp.ne.s32.totalorder %s558_s7, %s559_s8  ;;  %p565_p1 = scmp.lt.s32.totalorder %s563_s21, %s559_s8 }
  0x1c   : > { %v476_v19 = vcvt.f32.s32 %v475_v16  ;;  %v480_v60 = vsel %vm477_vm8, %v478_v58, %v479_v59 }
  0x1d   : > { %277 = vperm.xlu1 %530, %v151_v4   ;;  %265 = vperm.xlu0 %529, %v151_v4   ;;  %v481_v61 = vcvt.f32.s32 %v480_v60  ;;  %p561_p12 = pnand %p560_p11, %p668_p5  ;;  %p566_p2 = por %p565_p1, %p564_p0 }
  0x1e   : > { %vm173_vm1 = vcmp.eq.s32.totalorder %v476_v19, 2  ;;  %vm163_vm2 = vcmp.eq.s32.totalorder %v476_v19, 1  ;;  %vm153_vm3 = vcmp.eq.s32.totalorder %v476_v19, 0 }
  0x1f   : > { %289 = vperm.xlu2 %531, %v151_v4   ;;  %v174_v24 = vsel %vm173_vm1, 1, %v608_v2  ;;  %v164_v25 = vsel %vm163_vm2, 1, %v608_v2  ;;  %v154_v26 = vsel %vm153_vm3, 1, %v608_v2  ;;  %vm199_vm9 = vcmp.eq.s32.totalorder %v481_v61, 1  ;;  %p562_p13 = pneg %p561_p12 }
  0x20   : > { %v175_v30 = vperm.slane %v174_v24, 0  ;;  %v165_v31 = vperm.slane %v164_v25, 0  ;;  %v155_v32 = vperm.slane %v154_v26, 0  ;;  %vm183_vm10 = vcmp.eq.s32.totalorder %v481_v61, 0 }
  0x21   : > { %vm215_vm11 = vcmp.eq.s32.totalorder %v481_v61, 2  ;;  %vm231_vm12 = vcmp.eq.s32.totalorder %v481_v61, 3  ;;  %vm247_vm13 = vcmp.eq.s32.totalorder %v481_v61, 4  ;;  %p567_p3 = pnand %p566_p2, %p562_p13 }
  0x22   : > { %vm720_vm5 = vcmp.eq.s32.totalorder %v175_v30, 1  ;;  %vm724_vm6 = vcmp.eq.s32.totalorder %v165_v31, 1  ;;  %vm156_vm7 = vcmp.eq.s32.totalorder %v155_v32, 1 }
  0x25   : > { %168 = vperm.xlu1 %530, %v144_v5   ;;  %159 = vperm.xlu0 %529, %v144_v5  }
  0x27   : > { %178 = vperm.xlu2 %531, %v144_v5  }
  0x2d   : > { %532 = vset.pattern.permute.xlu1 %v608_v2  ;;  %189 = vperm.xlu0 %529, %v145_v6  }
  0x2e   : > { %194 = vperm.xlu1 %532, %v146_v7  }
  0x2f   : > { %533 = vset.pattern.permute.xlu2 %v607_v1 }
  0x30   : > { %204 = vperm.xlu2 %533, %v145_v6  }
  0x35   : > { %534 = vset.pattern.permute.xlu0 %v607_v1  ;;  %v184_v1 = vsel %vm183_vm10, 1, %v608_v2 }
  0x36   : > { %535 = vset.pattern.permute.xlu1 %v609_v3  ;;  %208 = vperm.xlu0 %534, %v146_v7  }
  0x37   : > { %220 = vperm.xlu1 %535, %v145_v6  }
  0x38   : > { %536 = vset.pattern.permute.xlu2 %v609_v3 }
  0x39   : > { %224 = vperm.xlu2 %536, %v146_v7  }
  0x3e   : > { %539 = vset.pattern.permute.xlu0 %v610_v8 }
  0x3f   : > { %537 = vset.pattern.permute.xlu1 %v610_v8  ;;  %329 = vperm.xlu0 %539, %v151_v4   ;;  %v216_v4 = vsel %vm215_vm11, 1, %v608_v2 }
  0x40   : > { %236 = vperm.xlu1 %537, %v145_v6  }
  0x41   : > { %538 = vset.pattern.permute.xlu2 %v610_v8  ;;  %v232_v8 = vsel %vm231_vm12, 1, %v608_v2 }
  0x42   : > { %240 = vperm.xlu2 %538, %v146_v7   ;;  %v233_v13 = vperm.slane %v232_v8, 0 }
  0x44   : > { %vm765_vm1 = vcmp.eq.s32.totalorder %v233_v13, 1 }
  0x48   : > { %333 = vperm.xlu1 %537, %v152_v0   ;;  %v200_v0 = vsel %vm199_vm9, 1, %v608_v2 }
  0x49   : > { %v201_v5 = vperm.slane %v200_v0, 0 }
  0x4a   : > { %540 = vset.pattern.permute.xlu2 %v611_v9 }
  0x4b   : > { %252 = vperm.xlu2 %540, %v145_v6   ;;  %v185_v6 = vperm.slane %v184_v1, 0  ;;  %vm748_vm14 = vcmp.eq.s32.totalorder %v201_v5, 1 }
  0x4d   : > { %vm752_vm15 = vcmp.eq.s32.totalorder %v185_v6, 1 }
  0x50   : > { %541 = vset.pattern.permute.xlu1 %v611_v9  ;;  %v217_v9 = vperm.slane %v216_v4, 0 }
  0x51   : > { %256 = vperm.xlu1 %541, %v146_v7  }
  0x52   : > { %vm757_vm0 = vcmp.eq.s32.totalorder %v217_v9, 1 }
  0x71   : > { %v294_v14 = vpop.permute.xlu2 %293 }
  0x79   : > { %v290_v22 = vpop.permute.xlu2 %289 }
  0x81   : > { %v179_v39 = vpop.permute.xlu2 %178 }
  0x82   : > { %v181_v42 = vsel %vm720_vm5, %v179_v39, 0.0 }
  0x87   : > { %v282_v17 = vpop.permute.xlu1 %281  ;;  %v271_v18 = vpop.permute.xlu0 %270 }
  0x88   : > { %v275_v20 = vmul.f32 %v542_v15, %v271_v18 }
  0x8a   : > { %v285_v21 = vadd.f32 %v282_v17, %v275_v20  ;;  %v205_v57 = vpop.permute.xlu2 %204 }
  0x8b   : > { %v211_v17 = vsel %vm748_vm14, %v205_v57, 0.0 }
  0x8c   : > { %v287_v23 = vmax.f32 %v285_v21, 0.0 }
  0x8e   : > { %317 = vmatpush.msra.mxu0 %v287_v23  ;;  %468 = vmatpush.msra.mxu2 %v287_v23 }
  0x8f   : > { %v278_v27 = vpop.permute.xlu1 %277  ;;  %v266_v28 = vpop.permute.xlu0 %265 }
  0x90   : > { %v274_v29 = vmul.f32 %v542_v15, %v266_v28 }
  0x92   : > { %v284_v33 = vadd.f32 %v278_v27, %v274_v29 }
  0x93   : > { %v225_v63 = vpop.permute.xlu2 %224 }
  0x94   : > { %v286_v34 = vmax.f32 %v284_v33, 0.0  ;;  %v228_v30 = vsel %vm757_vm0, %v225_v63, 0.0 }
  0x96   : > { %318 = vmatpush.msra.mxu0 %v286_v34  ;;  %469 = vmatpush.msra.mxu2 %v286_v34 }
  0x97   : > { %v169_v40 = vpop.permute.xlu1 %168  ;;  %v160_v41 = vpop.permute.xlu0 %159  ;;  %460 = vmatmul.msk.f32.vlgmr.msra.gmra.mxu0 %vm296_vm4, %v147_v35  ;;  %461 = vmatmul.msk.f32.vlgmr.msra.gmra.mxu2 %vm296_vm4, %v148_v36 }
  0x98   : > { %v171_v43 = vsel %vm724_vm6, %v169_v40, 0.0  ;;  %v162_v44 = vsel %vm156_vm7, %v160_v41, 0.0 }
  0x99   : > { %v172_v45 = vadd.f32 %v171_v43, %v162_v44 }
  0x9b   : > { %v182_v46 = vadd.f32 %v181_v42, %v172_v45 }
  0x9c   : > { %v241_v10 = vpop.permute.xlu2 %240 }
  0x9d   : > { %374 = vst [vmem:[%s706_s16 + $0x1] sm:$0xff] %v182_v46  ;;  %v244_v35 = vsel %vm765_vm1, %v241_v10, 0.0 }
  0x9f   : > { %v190_v3 = vpop.permute.xlu0 %189 }
  0xa0   : > { %v195_v56 = vpop.permute.xlu1 %194  ;;  %v197_v18 = vsel %vm752_vm15, %v190_v3, 0.0 }
  0xa1   : > { %v213_v24 = vadd.f32 %v211_v17, %v197_v18 }
  0xa5   : > { %v253_v27 = vpop.permute.xlu2 %252 }
  0xa8   : > { %v209_v16 = vpop.permute.xlu0 %208 }
  0xa9   : > { %v221_v62 = vpop.permute.xlu1 %220  ;;  %v212_v23 = vsel %vm748_vm14, %v209_v16, 0.0 }
  0xb1   : > { %v330_v33 = vpop.permute.xlu0 %329 }
  0xb2   : > { %v237_v7 = vpop.permute.xlu1 %236 }
  0xb3   : > { %v243_v25 = vsel %vm765_vm1, %v237_v7, 0.0 }
  0xba   : > { %v334_v21 = vpop.permute.xlu1 %333 }
  0xc3   : > { %v257_v40 = vpop.permute.xlu1 %256 }
 0x114   : > { %v320_v47 = vpop.f32.mrf.mxu0 }
 0x115   : > { %v321_v49 = vadd.f32 %v320_v47, %v290_v22  ;;  %v227_v22 = vsel %vm757_vm0, %v221_v62, 0.0 }
 0x116   : > { %v229_v26 = vadd.f32 %v227_v22, %v213_v24 }
 0x117   : > { %v326_v52 = vmax.f32 %v321_v49, 0.0 }
 0x118   : > { %v245_v31 = vadd.f32 %v243_v25, %v229_v26 }
 0x11a   : > { %v323_v48 = vpop.f32.mrf.mxu2 }
 0x11b   : > { %v324_v50 = vadd.f32 %v323_v48, %v294_v14  ;;  %v248_v14 = vsel %vm247_vm13, 1, %v608_v2  ;;  %v198_v2 = vsel %vm752_vm15, %v195_v56, 0.0 }
 0x11c   : > { %v249_v20 = vperm.slane %v248_v14, 0  ;;  %v214_v29 = vadd.f32 %v212_v23, %v198_v2 }
 0x11d   : > { %v327_v51 = vmax.f32 %v324_v50, 0.0 }
 0x11e   : > { %vm777_vm2 = vcmp.eq.s32.totalorder %v249_v20, 1  ;;  %v230_v34 = vadd.f32 %v228_v30, %v214_v29 }
 0x11f   : > { %356 = vmatpush.msra.mxu1 %v327_v51  ;;  %470 = vmatpush.msra.mxu3 %v327_v51  ;;  %v259_v32 = vsel %vm777_vm2, %v253_v27, 0.0  ;;  %v260_v44 = vsel %vm777_vm2, %v257_v40, 0.0 }
 0x120   : > { %v261_v39 = vadd.f32 %v259_v32, %v245_v31  ;;  %v246_v42 = vadd.f32 %v244_v35, %v230_v34 }
 0x121   : > { %357 = vmatpush.msra.mxu1 %v326_v52  ;;  %471 = vmatpush.msra.mxu3 %v326_v52 }
 0x122   : > { %462 = vmatmul.msk.f32.vlgmr.msra.gmra.mxu1 %vm296_vm4, %v149_v53  ;;  %463 = vmatmul.msk.f32.vlgmr.msra.gmra.mxu3 %vm296_vm4, %v150_v54  ;;  %v367_v45 = vsel %vm724_vm6, %v261_v39, 0.0  ;;  %v262_v49 = vadd.f32 %v260_v44, %v246_v42 }
 0x124   : > { %v368_v52 = vsel %vm724_vm6, %v262_v49, 0.0 }
 0x19f   : > { %v359_v36 = vpop.f32.mrf.mxu1 }
 0x1a0   : > { %v360_v41 = vadd.f32 %v359_v36, %v330_v33 }
 0x1a2   : > { %v365_v43 = vmax.f32 %v360_v41, 0.0 }
 0x1a4   : > { %v369_v46 = vsel %vm720_vm5, %v365_v43, 0.0 }
 0x1a5   : > { %v371_v47 = vadd.f32 %v369_v46, %v367_v45  ;;  %v362_v48 = vpop.f32.mrf.mxu3 }
 0x1a6   : > { %v363_v50 = vadd.f32 %v362_v48, %v334_v21 }
 0x1a7   : > { %375 = vst [vmem:[%s706_s16 + $0x9] sm:$0xff] %v371_v47 }
 0x1a8   : > { %v366_v51 = vmax.f32 %v363_v50, 0.0 }
 0x1aa   : > { %v370_v53 = vsel %vm720_vm5, %v366_v51, 0.0 }
 0x1ab   : > { %v372_v54 = vadd.f32 %v370_v53, %v368_v52 }
 0x1ad   : > { %376 = vst [vmem:[%s706_s16 + $0x11] sm:$0xff] %v372_v54 }
 0x1ae   : > { %570 = shalt.err (!%p567_p3)
}
 0x1af   : > { %s612_s4 = smov 128   ;;  %s613_s16 = smov 384  }
 0x1b0   : > { %s614_s24 = smov 8  }
 0x1b1   : > { %482 = dma.vmem_to_hbm [thread:$0]  (%p668_p5), %s390_s13, 512, %s392_s5, %s378_s6, %s612_s4, %s613_s16, %s614_s24  }
 0x1b2 PF: > { %p488_p4 = scmp.ge.s32.totalorder %s605_s12, 2  ;;  %s406_s25 = sand.u32 1, %s593_s9  }
 0x1b3   : > { %s407_s26 = scalar_lea.sflag [#allocation3], %s406_s25 }
 0x1b4   : > { %p485_p7 = pnand %p488_p4, %p672_p6 }
 0x1b6   : > { %p486_p8 = pneg %p485_p7 }
 0x1b8   : > { %588 = dma.done.wait (%p486_p8), %s407_s26, 512  }
 0x1b9   : > { %590 = vsyncadd (%p486_p8), %s407_s26, 4294966784  ;;  %p12_p9 = scmp.ge.s32.totalorder %s655_s15, 5   ;;  %s852_s9 = smov %s597_s10 }
 0x1ba   : > { %s853_s10 = smov %s601_s11  ;;  %s854_s11 = smov %s666_s18 }
 0x1bb   : > { %s855_s12 = smov %s655_s15  ;;  %14 = sbr.rel (!%p12_p9) target bundleno = 3 (0x3), region = 63 }
 0x1c0   :  { %413 = vsyncpa [#allocation3], 1 }
 0x1c1   :  { %415 = vsyncpa [#allocation3 + $0x1], 1 }

</bundles_post_ra>
